<compile_context>
chip_gen: v7x
topology: tpu7x:2x2x1
jax: 0.10.0
libtpu: 0.0.40
codegen_flags: <defaults>
</compile_context>

<pallas_src>
import numpy as np
import jax
import jax.numpy as jnp
from jax.scipy.linalg import block_diag
from jax.experimental import pallas as pl
from jax.experimental.pallas import tpu as pltpu

EPS = 1e-5


# ---------------- fused Pallas kernel ----------------

def advskm_disc_kernel(x_ref, w1_ref, w2_ref, w34_ref, vec_ref, o_ref):
    """Entire AdvSKM_Disc forward, 3 serial matmuls.

    Shapes (mdt = matmul operand dtype, f32 or bf16):
      x    : (N, D)      mdt
      w1   : (D, 2H)     mdt   -- [branch1 | branch2] first Linear, fused
      w2   : (2H, 2H)    mdt   -- block-diag of the second Linear per branch
      w34  : (2H, 2H2)   mdt   -- block-diag of folded (W3 @ W4) per branch
      vecs : (8, 2H)     f32   -- rows: b1, b2, g2, be2, b34, g4, be4, pad
                                  (rows 4-6 only use the first 2H2 lanes)
      o    : (N, 2H2) == (N, H)  f32   [cos branch | relu branch]
    """
    Hx = w2_ref.shape[1]          # 2*H
    H2x = w34_ref.shape[1]        # 2*H2
    H = Hx // 2
    H2 = H2x // 2

    vecs = vec_ref[...]           # (8, 2H) f32, one tiny load
    b1 = vecs[0:1, :]
    b2 = vecs[1:2, :]
    g2 = vecs[2:3, :]
    be2 = vecs[3:4, :]
    b34 = vecs[4:5, :H2x]
    g4 = vecs[5:6, :H2x]
    be4 = vecs[6:7, :H2x]

    def bn(v, gamma, beta):
        # PyTorch BatchNorm1d training-mode forward: per-feature batch mean,
        # biased variance, eps=1e-5 -- centered two-pass form.
        mean = jnp.mean(v, axis=0, keepdims=True)
        ctr = v - mean
        var = jnp.mean(ctr * ctr, axis=0, keepdims=True)
        return ctr * jax.lax.rsqrt(var + EPS) * gamma + beta

    def act_split(v, split):
        # first `split` lanes -> cos (branch 1), remaining lanes -> relu (branch 2)
        cols = jax.lax.broadcasted_iota(jnp.int32, v.shape, 1)
        return jnp.where(cols < split, jnp.cos(v), jnp.maximum(v, 0.0))

    mdt = w1_ref.dtype
    h = jnp.dot(x_ref[...], w1_ref[...], preferred_element_type=jnp.float32) + b1
    h = jnp.dot(h.astype(mdt), w2_ref[...], preferred_element_type=jnp.float32) + b2
    h = act_split(bn(h, g2, be2), H)
    h = jnp.dot(h.astype(mdt), w34_ref[...], preferred_element_type=jnp.float32) + b34
    h = act_split(bn(h, g4, be4), H2)
    o_ref[...] = h.astype(o_ref.dtype)        # single lane-dense full-tile store


# ---------------- wrapper ----------------

def advskm_disc_forward(x, params):
    N = x.shape[0]
    H2x = params["w34"].shape[1]              # == hidden_dim
    mdt = params["w1"].dtype
    vmem = pl.BlockSpec(memory_space=pltpu.MemorySpace.VMEM)
    # TODO(synk): for large N, add a 1-D grid over rows (weights pinned via a
    # constant index_map), two-pass BatchNorm with scratch accumulators, an
    # explicit vmem_limit_bytes, and dimension_semantics=("parallel",) so the
    # work shards across v7x's two TensorCores.
    return pl.pallas_call(
        advskm_disc_kernel,
        out_shape=jax.ShapeDtypeStruct((N, H2x), jnp.float32),
        in_specs=[vmem] * 5,
        out_specs=vmem,
    )(x.astype(mdt), params["w1"], params["w2"], params["w34"], params["vecs"])


# ---------------- parameter construction (mirrors nn.Linear / nn.BatchNorm1d init) ----------------

def _linear_init(key, fan_in, fan_out):
    kw, kb = jax.random.split(key)
    bound = 1.0 / np.sqrt(fan_in)
    # stored pre-transposed as (fan_in, fan_out) so the kernel does x @ W
    w = jax.random.uniform(kw, (fan_in, fan_out), jnp.float32, -bound, bound)
    b = jax.random.uniform(kb, (1, fan_out), jnp.float32, -bound, bound)
    return w, b


def make_advskm_params(key, input_dim, hidden_dim, matmul_dtype=jnp.float32):
    """Returns (fused kernel params, raw per-branch params for the reference)."""
    H, H2 = hidden_dim, hidden_dim // 2
    kb0, kb1 = jax.random.split(key)
    raw = []
    for kb in (kb0, kb1):                          # branch 0 (cos), branch 1 (relu)
        k = jax.random.split(kb, 4)
        w1, b1 = _linear_init(k[0], input_dim, H)
        w2, b2 = _linear_init(k[1], H, H)
        w3, b3 = _linear_init(k[2], H, H2)
        w4, b4 = _linear_init(k[3], H2, H2)
        raw.append(dict(w1=w1, b1=b1, w2=w2, b2=b2, w3=w3, b3=b3, w4=w4, b4=b4))

    # Fold Linear3 ∘ Linear4 (no nonlinearity between them).
    w34 = [r["w3"] @ r["w4"] for r in raw]                       # (H, H2) each
    b34 = [r["b3"] @ r["w4"] + r["b4"] for r in raw]             # (1, H2) each

    w1c = jnp.concatenate([r["w1"] for r in raw], axis=1)        # (D, 2H)
    w2bd = block_diag(raw[0]["w2"], raw[1]["w2"])                # (2H, 2H)
    w34bd = block_diag(w34[0], w34[1])                           # (2H, 2H2)

    # Pack all per-feature vectors into one small f32 ref.
    vecs = jnp.zeros((8, 2 * H), jnp.float32)
    vecs = vecs.at[0, :].set(jnp.concatenate([r["b1"][0] for r in raw]))
    vecs = vecs.at[1, :].set(jnp.concatenate([r["b2"][0] for r in raw]))
    vecs = vecs.at[2, :].set(1.0)                   # BN1 gamma default (=1); row 3 beta (=0)
    vecs = vecs.at[4, :2 * H2].set(jnp.concatenate([b[0] for b in b34]))
    vecs = vecs.at[5, :2 * H2].set(1.0)             # BN2 gamma default; row 6 beta; row 7 pad

    params = dict(
        w1=w1c.astype(matmul_dtype),
        w2=w2bd.astype(matmul_dtype),
        w34=w34bd.astype(matmul_dtype),
        vecs=vecs,
    )
    return params, raw


# ---------------- references ----------------

def advskm_disc_reference(x, raw):
    """Pure-JAX, PyTorch-faithful structure (per-branch, un-folded layers)."""
    def bn(v):
        mean = jnp.mean(v, axis=0, keepdims=True)
        var = jnp.mean((v - mean) ** 2, axis=0, keepdims=True)
        return (v - mean) / jnp.sqrt(var + EPS)     # gamma=1, beta=0 defaults

    def branch(p, act):
        h = x @ p["w1"] + p["b1"]
        h = h @ p["w2"] + p["b2"]
        h = act(bn(h))
        h = h @ p["w3"] + p["b3"]
        h = h @ p["w4"] + p["b4"]
        return act(bn(h))

    return jnp.concatenate(
        [branch(raw[0], jnp.cos), branch(raw[1], lambda v: jnp.maximum(v, 0.0))],
        axis=1)


def fused_reference(x, params):
    """Pure-JAX replica of the fused kernel math (same operand dtypes)."""
    H = params["w2"].shape[1] // 2
    H2x = params["w34"].shape[1]
    mdt = params["w1"].dtype
    vecs = params["vecs"]
    b1, b2, g2, be2 = vecs[0:1, :], vecs[1:2, :], vecs[2:3, :], vecs[3:4, :]
    b34, g4, be4 = vecs[4:5, :H2x], vecs[5:6, :H2x], vecs[6:7, :H2x]

    def bn(v, g, b):
        m = jnp.mean(v, axis=0, keepdims=True)
        c = v - m
        return c * jax.lax.rsqrt(jnp.mean(c * c, axis=0, keepdims=True) + EPS) * g + b

    def act(v, split):
        cols = jax.lax.broadcasted_iota(jnp.int32, v.shape, 1)
        return jnp.where(cols < split, jnp.cos(v), jnp.maximum(v, 0.0))

    h = jnp.dot(x.astype(mdt), params["w1"], preferred_element_type=jnp.float32) + b1
    h = jnp.dot(h.astype(mdt), params["w2"], preferred_element_type=jnp.float32) + b2
    h = act(bn(h, g2, be2), H)
    h = jnp.dot(h.astype(mdt), params["w34"], preferred_element_type=jnp.float32) + b34
    return act(bn(h, g4, be4), H2x // 2)


# ---------------- main ----------------

if __name__ == "__main__":
    batch = 8
    input_dim = 32
    hidden_dim = 32            # -> hid_dim // 2 = 16, output dim = 32

    key = jax.random.PRNGKey(0)
    kx, kp = jax.random.split(key)
    x = jax.random.normal(kx, (batch, input_dim), jnp.float32)

    # ---- f32 matmul operands: primary correctness check vs PyTorch-faithful ref
    params_f32, raw = make_advskm_params(kp, input_dim, hidden_dim, jnp.float32)
    out = jax.block_until_ready(advskm_disc_forward(x, params_f32))
    ref = advskm_disc_reference(x, raw)
    assert out.shape == (batch, hidden_dim), (out.shape, (batch, hidden_dim))
    assert bool(jnp.all(jnp.isfinite(out)))
    # Linear3∘Linear4 fold + block-diag restructure reorder f32 sums slightly.
    assert bool(jnp.allclose(out, ref, rtol=1e-3, atol=1e-3)), \
        float(jnp.max(jnp.abs(out - ref)))

    # ---- bf16 matmul operands (v6e/v7x MXU fast path); BN/activations stay f32
    params_bf16 = {k: (v.astype(jnp.bfloat16) if k in ("w1", "w2", "w34") else v)
                   for k, v in params_f32.items()}
    out_bf16 = jax.block_until_ready(advskm_disc_forward(x, params_bf16))
    ref_bf16 = fused_reference(x, params_bf16)
    assert out_bf16.shape == (batch, hidden_dim)
    assert bool(jnp.all(jnp.isfinite(out_bf16)))
    assert bool(jnp.allclose(out_bf16, ref_bf16, rtol=2e-3, atol=2e-3)), \
        float(jnp.max(jnp.abs(out_bf16 - ref_bf16)))

    print("KERNEL_OK")
</pallas_src>

<mosaic_0001>
module attributes {stable_mosaic.version = 11 : i64} {
  func.func @advskm_disc_kernel(%arg0: memref<8x32xf32, #tpu.memory_space<vmem>>, %arg1: memref<32x64xf32, #tpu.memory_space<vmem>>, %arg2: memref<64x64xf32, #tpu.memory_space<vmem>>, %arg3: memref<64x32xf32, #tpu.memory_space<vmem>>, %arg4: memref<8x64xf32, #tpu.memory_space<vmem>>, %arg5: memref<8x32xf32, #tpu.memory_space<vmem>>) attributes {dimension_semantics = [], scalar_prefetch = 0 : i64, scratch_operands = 0 : i64, tpu.core_type = #tpu.core_type<tc>} {
    %c0 = arith.constant 0 : index
    %c0_0 = arith.constant 0 : index
    %0 = vector.load %arg4[%c0, %c0_0] : memref<8x64xf32, #tpu.memory_space<vmem>>, vector<8x64xf32>
    %1 = vector.extract_strided_slice %0 {offsets = [0, 0], sizes = [1, 64], strides = [1, 1]} : vector<8x64xf32> to vector<1x64xf32>
    %2 = vector.extract_strided_slice %0 {offsets = [1, 0], sizes = [1, 64], strides = [1, 1]} : vector<8x64xf32> to vector<1x64xf32>
    %3 = vector.extract_strided_slice %0 {offsets = [2, 0], sizes = [1, 64], strides = [1, 1]} : vector<8x64xf32> to vector<1x64xf32>
    %4 = vector.extract_strided_slice %0 {offsets = [3, 0], sizes = [1, 64], strides = [1, 1]} : vector<8x64xf32> to vector<1x64xf32>
    %5 = vector.extract_strided_slice %0 {offsets = [4, 0], sizes = [1, 32], strides = [1, 1]} : vector<8x64xf32> to vector<1x32xf32>
    %6 = vector.extract_strided_slice %0 {offsets = [5, 0], sizes = [1, 32], strides = [1, 1]} : vector<8x64xf32> to vector<1x32xf32>
    %7 = vector.extract_strided_slice %0 {offsets = [6, 0], sizes = [1, 32], strides = [1, 1]} : vector<8x64xf32> to vector<1x32xf32>
    %c0_1 = arith.constant 0 : index
    %c0_2 = arith.constant 0 : index
    %8 = vector.load %arg0[%c0_1, %c0_2] : memref<8x32xf32, #tpu.memory_space<vmem>>, vector<8x32xf32>
    %c0_3 = arith.constant 0 : index
    %c0_4 = arith.constant 0 : index
    %9 = vector.load %arg1[%c0_3, %c0_4] : memref<32x64xf32, #tpu.memory_space<vmem>>, vector<32x64xf32>
    %cst = arith.constant dense<0.000000e+00> : vector<8x64xf32>
    %10 = tpu.matmul %8, %9, %cst {dimension_numbers = #tpu.dot_dimension_numbers<[1], [0], [0], [1], [0, 0, 1, 1], [], []>} : vector<8x32xf32>, vector<32x64xf32>, vector<8x64xf32> -> vector<8x64xf32>
    %11 = vector.broadcast %1 : vector<1x64xf32> to vector<8x64xf32>
    %12 = arith.addf %10, %11 : vector<8x64xf32>
    %c0_5 = arith.constant 0 : index
    %c0_6 = arith.constant 0 : index
    %13 = vector.load %arg2[%c0_5, %c0_6] : memref<64x64xf32, #tpu.memory_space<vmem>>, vector<64x64xf32>
    %cst_7 = arith.constant dense<0.000000e+00> : vector<8x64xf32>
    %14 = tpu.matmul %12, %13, %cst_7 {dimension_numbers = #tpu.dot_dimension_numbers<[1], [0], [0], [1], [0, 0, 1, 1], [], []>} : vector<8x64xf32>, vector<64x64xf32>, vector<8x64xf32> -> vector<8x64xf32>
    %15 = vector.broadcast %2 : vector<1x64xf32> to vector<8x64xf32>
    %16 = arith.addf %14, %15 : vector<8x64xf32>
    %cst_8 = arith.constant dense<0.000000e+00> : vector<64xf32>
    %17 = vector.multi_reduction <add>, %16, %cst_8 [0] : vector<8x64xf32> to vector<64xf32>
    %18 = vector.shape_cast %17 : vector<64xf32> to vector<1x64xf32>
    %cst_9 = arith.constant 8.000000e+00 : f32
    %19 = vector.broadcast %cst_9 : f32 to vector<1x64xf32>
    %20 = arith.divf %18, %19 : vector<1x64xf32>
    %21 = vector.broadcast %20 : vector<1x64xf32> to vector<8x64xf32>
    %22 = arith.subf %16, %21 : vector<8x64xf32>
    %23 = arith.mulf %22, %22 : vector<8x64xf32>
    %cst_10 = arith.constant dense<0.000000e+00> : vector<64xf32>
    %24 = vector.multi_reduction <add>, %23, %cst_10 [0] : vector<8x64xf32> to vector<64xf32>
    %25 = vector.shape_cast %24 : vector<64xf32> to vector<1x64xf32>
    %cst_11 = arith.constant 8.000000e+00 : f32
    %26 = vector.broadcast %cst_11 : f32 to vector<1x64xf32>
    %27 = arith.divf %25, %26 : vector<1x64xf32>
    %cst_12 = arith.constant 9.99999974E-6 : f32
    %28 = vector.broadcast %cst_12 : f32 to vector<1x64xf32>
    %29 = arith.addf %27, %28 : vector<1x64xf32>
    %30 = math.rsqrt %29 : vector<1x64xf32>
    %31 = vector.broadcast %30 : vector<1x64xf32> to vector<8x64xf32>
    %32 = arith.mulf %22, %31 : vector<8x64xf32>
    %33 = vector.broadcast %3 : vector<1x64xf32> to vector<8x64xf32>
    %34 = arith.mulf %32, %33 : vector<8x64xf32>
    %35 = vector.broadcast %4 : vector<1x64xf32> to vector<8x64xf32>
    %36 = arith.addf %34, %35 : vector<8x64xf32>
    %37 = tpu.iota {dimensions = array<i32: 1>} : vector<8x64xi32>
    %c32_i32 = arith.constant 32 : i32
    %38 = vector.broadcast %c32_i32 : i32 to vector<8x64xi32>
    %39 = arith.cmpi slt, %37, %38 : vector<8x64xi32>
    %40 = math.cos %36 : vector<8x64xf32>
    %cst_13 = arith.constant 0.000000e+00 : f32
    %41 = vector.broadcast %cst_13 : f32 to vector<8x64xf32>
    %42 = arith.maximumf %36, %41 : vector<8x64xf32>
    %43 = arith.select %39, %40, %42 : vector<8x64xi1>, vector<8x64xf32>
    %c0_14 = arith.constant 0 : index
    %c0_15 = arith.constant 0 : index
    %44 = vector.load %arg3[%c0_14, %c0_15] : memref<64x32xf32, #tpu.memory_space<vmem>>, vector<64x32xf32>
    %cst_16 = arith.constant dense<0.000000e+00> : vector<8x32xf32>
    %45 = tpu.matmul %43, %44, %cst_16 {dimension_numbers = #tpu.dot_dimension_numbers<[1], [0], [0], [1], [0, 0, 1, 1], [], []>} : vector<8x64xf32>, vector<64x32xf32>, vector<8x32xf32> -> vector<8x32xf32>
    %46 = vector.broadcast %5 : vector<1x32xf32> to vector<8x32xf32>
    %47 = arith.addf %45, %46 : vector<8x32xf32>
    %cst_17 = arith.constant dense<0.000000e+00> : vector<32xf32>
    %48 = vector.multi_reduction <add>, %47, %cst_17 [0] : vector<8x32xf32> to vector<32xf32>
    %49 = vector.shape_cast %48 : vector<32xf32> to vector<1x32xf32>
    %cst_18 = arith.constant 8.000000e+00 : f32
    %50 = vector.broadcast %cst_18 : f32 to vector<1x32xf32>
    %51 = arith.divf %49, %50 : vector<1x32xf32>
    %52 = vector.broadcast %51 : vector<1x32xf32> to vector<8x32xf32>
    %53 = arith.subf %47, %52 : vector<8x32xf32>
    %54 = arith.mulf %53, %53 : vector<8x32xf32>
    %cst_19 = arith.constant dense<0.000000e+00> : vector<32xf32>
    %55 = vector.multi_reduction <add>, %54, %cst_19 [0] : vector<8x32xf32> to vector<32xf32>
    %56 = vector.shape_cast %55 : vector<32xf32> to vector<1x32xf32>
    %cst_20 = arith.constant 8.000000e+00 : f32
    %57 = vector.broadcast %cst_20 : f32 to vector<1x32xf32>
    %58 = arith.divf %56, %57 : vector<1x32xf32>
    %cst_21 = arith.constant 9.99999974E-6 : f32
    %59 = vector.broadcast %cst_21 : f32 to vector<1x32xf32>
    %60 = arith.addf %58, %59 : vector<1x32xf32>
    %61 = math.rsqrt %60 : vector<1x32xf32>
    %62 = vector.broadcast %61 : vector<1x32xf32> to vector<8x32xf32>
    %63 = arith.mulf %53, %62 : vector<8x32xf32>
    %64 = vector.broadcast %6 : vector<1x32xf32> to vector<8x32xf32>
    %65 = arith.mulf %63, %64 : vector<8x32xf32>
    %66 = vector.broadcast %7 : vector<1x32xf32> to vector<8x32xf32>
    %67 = arith.addf %65, %66 : vector<8x32xf32>
    %68 = tpu.iota {dimensions = array<i32: 1>} : vector<8x32xi32>
    %c16_i32 = arith.constant 16 : i32
    %69 = vector.broadcast %c16_i32 : i32 to vector<8x32xi32>
    %70 = arith.cmpi slt, %68, %69 : vector<8x32xi32>
    %71 = math.cos %67 : vector<8x32xf32>
    %cst_22 = arith.constant 0.000000e+00 : f32
    %72 = vector.broadcast %cst_22 : f32 to vector<8x32xf32>
    %73 = arith.maximumf %67, %72 : vector<8x32xf32>
    %74 = arith.select %70, %71, %73 : vector<8x32xi1>, vector<8x32xf32>
    %c0_23 = arith.constant 0 : index
    %c0_24 = arith.constant 0 : index
    %75 = vector.load %arg5[%c0_23, %c0_24] : memref<8x32xf32, #tpu.memory_space<vmem>>, vector<8x32xf32>
    tpu.vector_store %arg5[%c0_23, %c0_24], %74 {strides = array<i32>} : memref<8x32xf32, #tpu.memory_space<vmem>>, vector<8x32xf32>,
    return
  }
}

</mosaic_0001>

<bundles_post_ra>
// kernel: tpu_custom_call.1
= control target key start
LH: loop header
LB: loop body
LE: loop exit
PB: predicated region body
PF: predicated region fallthrough
CT: control target
= control target key end

     0   :  { %10 = vsyncpa [#allocation3], 0  ;;  %s1012_s0 = inlined_call_operand.hbm [shape: f32[8,32], index: 0, kind: input, shape index: {}]   ;;  %s1013_s1 = inlined_call_operand.vmem [shape: f32[32,64], index: 1, kind: input, shape index: {}]   ;;  %s1014_s2 = inlined_call_operand.vmem [shape: f32[64,64], index: 2, kind: input, shape index: {}]   ;;  %s1015_s3 = inlined_call_operand.vmem [shape: f32[64,32], index: 3, kind: input, shape index: {}]   ;;  %s1016_s4 = inlined_call_operand.vmem [shape: f32[8,64], index: 4, kind: input, shape index: {}]   ;;  %s1017_s5 = inlined_call_operand.hbm [shape: f32[8,32], index: 5, kind: output, shape index: {}]  }
   0x1   :  { %11 = vsyncpa [#allocation4], 0  ;;  %s773_s18 = smov [#allocation2]   ;;  %s725_s22 = scalar_lea.hbm %s1012_s0, 128 }
   0x2   :  { %s18_s19 = sshll.u32 %s773_s18, 4  ;;  %p726_p0 = scmp.ne.s32.totalorder %s1012_s0, %s725_s22  ;;  %s19_s19 = int_to_ptr.vmem [resolvable:$true] %s18_s19 }
   0x3   :  { %p729_p1 = scmp.lt.u32.totalorder %s725_s22, %s1012_s0 }
   0x5   :  { %p731_p2 = pnand %p729_p1, %p726_p0 }
   0x7   :  { %734 = shalt.err (!%p731_p2)
}
   0x8   :  { %s735_s27 = scalar_lea.vmem %s19_s19, 128  ;;  %p740_p4 = scmp.lt.s32.totalorder %s19_s19, %s19_s19 }
   0x9   :  { %p736_p3 = scmp.ne.s32.totalorder %s19_s19, %s735_s27  ;;  %p741_p5 = scmp.lt.s32.totalorder %s735_s27, %s735_s27 }
   0xb   :  { %p742_p6 = por %p741_p5, %p740_p4 }
   0xd   :  { %p743_p7 = pnand %p742_p6, %p736_p3 }
   0xf   :  { %746 = shalt.err (!%p743_p7)
}
  0x10   :  { %21 = dma.hbm_to_vmem [thread:$0]  %s1012_s0, 128, %s19_s19, [#allocation3]  }
  0x11   :  { %769 = dma.done.wait [#allocation3], 128  }
  0x12   :  { %770 = vsyncadd [#allocation3], 4294967168  ;;  %v774_v0 = vmov 0.0|0.0   ;;  %vm775_vm0 = vmmov 0   ;;  %v776_v1 = vmov 0.0   ;;  %v35_v2 = vld [vmem:[%s1013_s1] sm:$0xff]  ;;  %v39_v21 = vlaneseq }
  0x13   :  { %664 = vmatprep.subr.bf16.mxu0 %v774_v0  ;;  %623 = vmatprep.mubr.msk.f32.mxu0 %vm775_vm0, %v776_v1  ;;  %v36_v3 = vld [vmem:[%s1013_s1 + $0x8] sm:$0xff]  ;;  %v37_v4 = vld [vmem:[%s1013_s1 + $0x10] sm:$0xff]  ;;  %v38_v6 = vld [vmem:[%s1013_s1 + $0x18] sm:$0xff]  ;;  %vm43_vm1 = vcmask 261120   ;;  %vm129_vm2 = vcmask 523264  }
  0x14   :  { %670 = vmatprep.subr.bf16.mxu1 %v774_v0  ;;  %642 = vmatprep.mubr.msk.f32.mxu1 %vm775_vm0, %v776_v1  ;;  %v665_v5 = vpack.c.bf16 %v36_v3, %v35_v2  ;;  %v117_v7 = vld [vmem:[%s1014_s2] sm:$0xff]  ;;  %v118_v8 = vld [vmem:[%s1014_s2 + $0x8] sm:$0xff]  ;;  %v119_v9 = vld [vmem:[%s1014_s2 + $0x10] sm:$0xff]  ;;  %v668_v11 = vpack.c.bf16 %v38_v6, %v37_v4  ;;  %v874_v22 = vshrl.u32 %v39_v21, 7 }
  0x15   :  { %v120_v10 = vld [vmem:[%s1014_s2 + $0x18] sm:$0xff]  ;;  %v671_v12 = vpack.c.bf16 %v118_v8, %v117_v7  ;;  %v121_v14 = vld [vmem:[%s1014_s2 + $0x20] sm:$0xff]  ;;  %v122_v15 = vld [vmem:[%s1014_s2 + $0x28] sm:$0xff] }
  0x16   :  { %666 = vmatpush3.bf16.msra.mxu0 %v665_v5  ;;  %v674_v13 = vpack.c.bf16 %v120_v10, %v119_v9  ;;  %v34_v16 = vld [vmem:[#allocation2] sm:$0xff]  ;;  %v677_v17 = vpack.c.bf16 %v122_v15, %v121_v14  ;;  %v123_v18 = vld [vmem:[%s1014_s2 + $0x30] sm:$0xff]  ;;  %v124_v19 = vld [vmem:[%s1014_s2 + $0x38] sm:$0xff]  ;;  %v41_v23 = vsub.s32 0, %v874_v22  ;;  %v127_v41 = vsub.s32 1, %v874_v22 }
  0x17   :  { %667 = vmatprep.subr.bf16.mxu0 %v774_v0  ;;  %672 = vmatpush3.bf16.msra.mxu1 %v671_v12  ;;  %v680_v20 = vpack.c.bf16 %v124_v19, %v123_v18  ;;  %v880_v24 = vld [vmem:[%s1016_s4] sm:$0xff]  ;;  %v344_v30 = vld [vmem:[%s1015_s3 + $0x8] sm:$0xff]  ;;  %v345_v31 = vld [vmem:[%s1015_s3 + $0x10] sm:$0xff]  ;;  %v232_v2 = vsub.s32 3, %v874_v22  ;;  %v777_v19 = vmov 683565275  }
  0x18   :  { %673 = vmatprep.subr.bf16.mxu1 %v774_v0  ;;  %v42_v25 = vrot.slane %v880_v24, %v41_v23  ;;  %v343_v29 = vld [vmem:[%s1015_s3] sm:$0xff]  ;;  %v346_v33 = vld [vmem:[%s1015_s3 + $0x18] sm:$0xff]  ;;  %v348_v36 = vld [vmem:[%s1015_s3 + $0x28] sm:$0xff]  ;;  %v128_v42 = vrot.slane %v880_v24, %v127_v41  ;;  %v778_v23 = vmov 2475754826  }
  0x19   :  { %v683_v32 = vpack.c.bf16 %v344_v30, %v343_v29  ;;  %v686_v34 = vpack.c.bf16 %v346_v33, %v345_v31  ;;  %v347_v35 = vld [vmem:[%s1015_s3 + $0x20] sm:$0xff]  ;;  %v349_v38 = vld [vmem:[%s1015_s3 + $0x30] sm:$0xff]  ;;  %v350_v39 = vld [vmem:[%s1015_s3 + $0x38] sm:$0xff]  ;;  %v233_v6 = vrot.slane %v880_v24, %v232_v2  ;;  %v780_v30 = vmov 2102212464   ;;  %s783_s3 = smov [#allocation5]  }
  0x1a   :  { %669 = vmatpush3.bf16.msra.mxu0 %v668_v11  ;;  %v689_v37 = vpack.c.bf16 %v348_v36, %v347_v35  ;;  %v692_v40 = vpack.c.bf16 %v350_v39, %v349_v38  ;;  %v781_v33 = vmov 920167782   ;;  %v782_v36 = vmov 1326507024   ;;  %s572_s17 = sshll.u32 %s783_s3, 4  ;;  %s573_s17 = int_to_ptr.vmem [resolvable:$true] %s572_s17 }
  0x1b   :  { %682 = vmatprep.subr.bf16.mxu0 %v774_v0  ;;  %675 = vmatpush3.bf16.msra.mxu1 %v674_v13  ;;  %s747_s18 = scalar_lea.vmem %s573_s17, 128  ;;  %p752_p9 = scmp.lt.s32.totalorder %s573_s17, %s573_s17 }
  0x1c   :  { %676 = vmatprep.subr.bf16.mxu1 %v774_v0  ;;  %p748_p8 = scmp.ne.s32.totalorder %s573_s17, %s747_s18  ;;  %p753_p10 = scmp.lt.s32.totalorder %s747_s18, %s747_s18 }
  0x1d   :  { %624 = vmatmul.mubr.msk.f32.vlgmr.msra.gmra.mrb[0].mxu0 %vm43_vm1, %v34_v16 }
  0x1e   :  { %661 = vmatprep.mubr.msk.f32.mxu0 %vm775_vm0, %v776_v1  ;;  %684 = vmatpush3.bf16.msra.mxu0 %v683_v32  ;;  %v227_v1 = vsub.s32 2, %v874_v22  ;;  %p754_p11 = por %p753_p10, %p752_p9 }
  0x1f   :  { %678 = vmatpush3.bf16.msra.mxu1 %v677_v17  ;;  %685 = vmatprep.subr.bf16.mxu0 %v774_v0 }
  0x20   :  { %679 = vmatprep.subr.bf16.mxu1 %v774_v0  ;;  %v228_v3 = vrot.slane %v880_v24, %v227_v1  ;;  %p755_p12 = pnand %p754_p11, %p748_p8 }
  0x22   :  { %687 = vmatpush3.bf16.msra.mxu0 %v686_v34 }
  0x23   :  { %681 = vmatpush3.bf16.msra.mxu1 %v680_v20  ;;  %688 = vmatprep.subr.bf16.mxu0 %v774_v0 }
  0x26   :  { %690 = vmatpush3.bf16.msra.mxu0 %v689_v37 }
  0x27   :  { %691 = vmatprep.subr.bf16.mxu0 %v774_v0 }
  0x2a   :  { %693 = vmatpush3.bf16.msra.mxu0 %v692_v40 }
  0xf0   :  { %v113_v26 = vpop.f32.mrb[0].mxu0 }
  0xf1   :  { %v114_v27 = vadd.f32 %v113_v26, %v42_v25  ;;  %v625_v28 = vpop.f32.mrb[1].mxu0 }
  0xf3   :  { %643 = vmatmul.mubr.msk.f32.vlgmr.msra.gmra.mrb[0].mxu1 %vm129_vm2, %v114_v27  ;;  %v779_v27 = vmov 2131351028  }
 0x1c6   :  { %v199_v43 = vpop.f32.mrb[0].mxu1 }
 0x1c7   :  { %v200_v44 = vadd.f32 %v199_v43, %v128_v42  ;;  %v644_v45 = vpop.f32.mrb[1].mxu1 }
 0x1c9   :  { %v203_v46 = vsel %vm129_vm2, %v200_v44, 0.0 }
 0x1ca   :  { %v204_v47 = vrot.slane %v203_v46, 4 }
 0x1cc   :  { %v205_v48 = vadd.f32 %v204_v47, %v203_v46 }
 0x1ce   :  { %v206_v49 = vrot.slane %v205_v48, 2 }
 0x1d0   :  { %v207_v50 = vadd.f32 %v206_v49, %v205_v48 }
 0x1d2   :  { %v208_v51 = vrot.slane %v207_v50, 1 }
 0x1d4   :  { %v209_v52 = vadd.f32 %v208_v51, %v207_v50 }
 0x1d6   :  { %v211_v53 = vmul.f32 0.125, %v209_v52 }
 0x1d8   :  { %v212_v54 = vsub.f32 %v200_v44, %v211_v53 }
 0x1da   :  { %v213_v55 = vmul.f32 %v212_v54, %v212_v54 }
 0x1dc   :  { %v214_v56 = vsel %vm129_vm2, %v213_v55, 0.0 }
 0x1dd   :  { %v215_v57 = vrot.slane %v214_v56, 4 }
 0x1df   :  { %v216_v58 = vadd.f32 %v215_v57, %v214_v56 }
 0x1e1   :  { %v217_v59 = vrot.slane %v216_v58, 2 }
 0x1e3   :  { %v218_v60 = vadd.f32 %v217_v59, %v216_v58 }
 0x1e5   :  { %v219_v61 = vrot.slane %v218_v60, 1 }
 0x1e7   :  { %v220_v62 = vadd.f32 %v219_v61, %v218_v60 }
 0x1e9   :  { %v221_v63 = vmul.f32 0.125, %v220_v62 }
 0x1eb   :  { %v222_v0 = vadd.f32 1e-05, %v221_v63 }
 0x1ed   :  { %713 = vrsqrt.f32 %v222_v0 }
 0x1f7   :  { %v714_v4 = vpop.eup %713 }
 0x1f8   :  { %v224_v5 = vmul.f32 %v714_v4, %v212_v54 }
 0x1fa   :  { %v229_v7 = vmul.f32 %v228_v3, %v224_v5 }
 0x1fc   :  { %v919_v8 = vadd.f32 %v233_v6, %v229_v7 }
 0x1fe   :  { %v241_v9 = vand.u32 2139095040, %v919_v8  ;;  %v238_v13 = vand.u32 2147483647, %v919_v8  ;;  %vm240_vm10 = vcmp.lt.s32.totalorder %v919_v8, 0  ;;  %vm330_vm0 = vweird.f32 %v919_v8 }
 0x200   :  { %v242_v10 = vshrl.u32 %v241_v9, 23  ;;  %v245_v17 = vand.u32 8388607, %v238_v13  ;;  %vm239_vm11 = vcmp.le.f32.partialorder %v238_v13, 0.7853982 }
 0x202   :  { %v583_v11 = vadd.s32 4294967169, %v242_v10  ;;  %v246_v38 = vor.u32 8388608, %v245_v17 }
 0x204   :  { %v248_v12 = vadd.s32 1, %v583_v11  ;;  %v286_v52 = vshll.u32 %v246_v38, 8 }
 0x206   :  { %vm249_vm3 = vcmp.gt.s32.totalorder %v248_v12, 0 }
 0x207   :  { %v250_v14 = vsel %vm249_vm3, %v248_v12, 0 }
 0x208   :  { %v252_v15 = vand.u32 31, %v250_v14  ;;  %v251_v18 = vshrl.u32 %v250_v14, 5 }
 0x20a   :  { %v253_v16 = vsub.s32 32, %v252_v15  ;;  %v255_v20 = vshll.u32 %v777_v19, %v252_v15  ;;  %v258_v25 = vshll.u32 %v778_v23, %v252_v15  ;;  %v261_v29 = vshll.u32 %v779_v27, %v252_v15 }
 0x20b   :  { %v264_v32 = vshll.u32 %v780_v30, %v252_v15  ;;  %v267_v35 = vshll.u32 %v781_v33, %v252_v15  ;;  %vm270_vm4 = vcmp.lt.s32.totalorder %v251_v18, 1  ;;  %vm273_vm5 = vcmp.lt.s32.totalorder %v251_v18, 4 }
 0x20c   :  { %v256_v26 = vshrl.u32 %v778_v23, %v253_v16  ;;  %v259_v28 = vshrl.u32 %v779_v27, %v253_v16  ;;  %v262_v31 = vshrl.u32 %v780_v30, %v253_v16  ;;  %v265_v34 = vshrl.u32 %v781_v33, %v253_v16 }
 0x20d   :  { %v268_v37 = vshrl.u32 %v782_v36, %v253_v16  ;;  %v254_v47 = vshrl.u32 %v777_v19, %v253_v16  ;;  %vm272_vm6 = vcmp.lt.s32.totalorder %v251_v18, 3  ;;  %vm271_vm7 = vcmp.lt.s32.totalorder %v251_v18, 2 }
 0x20e   :  { %v257_v39 = vor.u32 %v256_v26, %v255_v20  ;;  %v260_v40 = vor.u32 %v259_v28, %v258_v25  ;;  %v263_v41 = vor.u32 %v262_v31, %v261_v29  ;;  %v266_v42 = vor.u32 %v265_v34, %v264_v32 }
 0x20f   :  { %v269_v43 = vor.u32 %v268_v37, %v267_v35 }
 0x210   :  { %v275_v44 = vsel %vm273_vm5, %v263_v41, 2102212464  ;;  %v278_v45 = vsel %vm270_vm4, %v257_v39, %v260_v40  ;;  %v282_v46 = vsel %vm270_vm4, %v260_v40, %v263_v41  ;;  %v279_v48 = vsel %vm273_vm5, %v266_v42, 920167782 }
 0x211   :  { %v283_v49 = vsel %vm273_vm5, %v269_v43, 1326507024  ;;  %v280_v50 = vsel %vm272_vm6, %v263_v41, %v279_v48  ;;  %v274_v53 = vsel %vm270_vm4, %v254_v47, %v257_v39  ;;  %v276_v54 = vsel %vm272_vm6, %v260_v40, %v275_v44 }
 0x212   :  { %v284_v51 = vsel %vm272_vm6, %v266_v42, %v283_v49  ;;  %v281_v55 = vsel %vm271_vm7, %v278_v45, %v280_v50  ;;  %v277_v61 = vsel %vm271_vm7, %v274_v53, %v276_v54  ;;  %v951_v42 = vand.u32 127, %v39_v21 }
 0x213   :  { %v285_v56 = vsel %vm271_vm7, %v282_v46, %v284_v51  ;;  %v939_v59 = vmul.u32.u64.low %v286_v52, %v281_v55  ;;  %v940_v60 = vmul.u32.u64.high %v286_v52, %v281_v55, %v939_v59  ;;  %v293_v63 = vmul.u32 %v286_v52, %v277_v61 }
 0x214   :  { %v936_v57 = vmul.u32.u64.low %v286_v52, %v285_v56  ;;  %v937_v58 = vmul.u32.u64.high %v286_v52, %v285_v56, %v936_v57  ;;  %vm237_vm14 = vcmp.lt.s32.totalorder %v951_v42, 32  ;;  %v341_v48 = vmax.f32 %v919_v8, 0.0 }
 0x215   :  { %v296_v62 = vadd.s32 1, %v940_v60  ;;  %v353_v21 = vsub.s32 4, %v874_v22 }
 0x216   :  { %vm295_vm8 = vc.u32 %v937_v58, %v939_v59  ;;  %v294_v12 = vadd.s32 %v939_v59, %v937_v58 }
 0x217   :  { %v297_v0 = vsel %vm295_vm8, %v296_v62, %v940_v60  ;;  %v354_v51 = vrot.slane %v880_v24, %v353_v21 }
 0x218   :  { %v298_v1 = vadd.s32 %v297_v0, %v293_v63 }
 0x21a   :  { %v299_v2 = vadd.s32 536870912, %v298_v1 }
 0x21c   :  { %v300_v3 = vshrl.u32 %v299_v2, 30 }
 0x21e   :  { %v301_v4 = vshll.u32 %v300_v3, 30  ;;  %v324_v35 = vsub.s32 4, %v300_v3 }
 0x220   :  { %v302_v5 = vsub.s32 %v298_v1, %v301_v4  ;;  %v325_v38 = vsel %vm240_vm10, %v324_v35, %v300_v3 }
 0x221   :  { %v327_v39 = vsel %vm239_vm11, 0, %v325_v38 }
 0x222   :  { %v304_v6 = vsub.s32 0, %v302_v5  ;;  %v331_v40 = vand.u32 3, %v327_v39 }
 0x224   :  { %v584_v7 = vmin.u32 %v304_v6, %v302_v5  ;;  %vm336_vm12 = vcmp.eq.s32.totalorder %v331_v40, 2  ;;  %vm333_vm13 = vcmp.eq.s32.totalorder %v331_v40, 0  ;;  %vm332_vm15 = vcmp.lt.s32.totalorder %v331_v40, 2 }
 0x226   :  { %v306_v9 = vclz %v584_v7 }
 0x228   :  { %v585_v10 = vadd.s32 4294967294, %v306_v9 }
 0x22a   :  { %vm586_vm9 = vcmp.lt.s32.totalorder %v585_v10, 0 }
 0x22b   :  { %v309_v11 = vsel %vm586_vm9, 0, %v585_v10  ;;  %v451_v10 = vsub.s32 5, %v874_v22 }
 0x22c   :  { %v310_v14 = vsub.s32 32, %v309_v11  ;;  %v314_v15 = vsub.s32 4294967266, %v309_v11  ;;  %v311_v16 = vshll.u32 %v302_v5, %v309_v11  ;;  %v456_v11 = vsub.s32 6, %v874_v22 }
 0x22e   :  { %v312_v17 = vshrl.u32 %v294_v12, %v310_v14  ;;  %v315_v18 = vadd.s32 127, %v314_v15  ;;  %v452_v12 = vrot.slane %v880_v24, %v451_v10 }
 0x230   :  { %v313_v20 = vor.u32 %v312_v17, %v311_v16  ;;  %v316_v25 = vshll.u32 %v315_v18, 23  ;;  %v457_v16 = vrot.slane %v880_v24, %v456_v11 }
 0x232   :  { %v317_v26 = vor.u32 4788187, %v316_v25  ;;  %v320_v29 = vcvt.s32.f32 %v313_v20 }
 0x234   :  { %v318_v28 = vand.u32 2147483647, %v317_v26 }
 0x236   :  { %v321_v31 = vmul.f32 %v320_v29, %v318_v28 }
 0x238   :  { %v322_v32 = vxor.u32 2147483648, %v321_v31 }
 0x23a   :  { %v323_v34 = vsel %vm240_vm10, %v322_v32, %v321_v31 }
 0x23b   :  { %v326_v37 = vsel %vm239_vm11, %v919_v8, %v323_v34 }
 0x23c   :  { %715 = vcosq.f32 %v326_v37 }
 0x23d   :  { %717 = vsinq.f32 %v326_v37 }
 0x246   :  { %v716_v41 = vpop.eup %715 }
 0x247   :  { %v718_v43 = vpop.eup %717  ;;  %v337_v44 = vxor.u32 2147483648, %v716_v41 }
 0x248   :  { %v334_v45 = vxor.u32 2147483648, %v718_v43 }
 0x249   :  { %v338_v46 = vsel %vm336_vm12, %v337_v44, %v718_v43 }
 0x24a   :  { %v335_v13 = vsel %vm333_vm13, %v716_v41, %v334_v45  ;;  %vm459_vm13 = vcmp.lt.s32.totalorder %v951_v42, 16 }
 0x24b   :  { %v339_v47 = vsel %vm332_vm15, %v335_v13, %v338_v46 }
 0x24c   :  { %v340_v49 = vsel %vm330_vm0, nan, %v339_v47 }
 0x24d   :  { %v342_v50 = vsel %vm237_vm14, %v340_v49, %v341_v48 }
 0x24e   :  { %662 = vmatmul.mubr.msk.f32.vlgmr.msra.gmra.mrb[2].mxu0 %vm129_vm2, %v342_v50 }
 0x321   :  { %v424_v52 = vpop.f32.mrb[2].mxu0 }
 0x322   :  { %v425_v53 = vadd.f32 %v424_v52, %v354_v51  ;;  %v663_v54 = vpop.f32.mrb[3].mxu0 }
 0x324   :  { %v428_v55 = vsel %vm43_vm1, %v425_v53, 0.0 }
 0x325   :  { %v429_v56 = vrot.slane %v428_v55, 4 }
 0x327   :  { %v430_v57 = vadd.f32 %v429_v56, %v428_v55 }
 0x329   :  { %v431_v58 = vrot.slane %v430_v57, 2 }
 0x32b   :  { %v432_v59 = vadd.f32 %v431_v58, %v430_v57 }
 0x32d   :  { %v433_v60 = vrot.slane %v432_v59, 1 }
 0x32f   :  { %v434_v61 = vadd.f32 %v433_v60, %v432_v59 }
 0x331   :  { %v435_v8 = vmul.f32 0.125, %v434_v61 }
 0x333   :  { %v436_v62 = vsub.f32 %v425_v53, %v435_v8 }
 0x335   :  { %v437_v63 = vmul.f32 %v436_v62, %v436_v62 }
 0x337   :  { %v438_v0 = vsel %vm43_vm1, %v437_v63, 0.0 }
 0x338   :  { %v439_v1 = vrot.slane %v438_v0, 4 }
 0x33a   :  { %v440_v2 = vadd.f32 %v439_v1, %v438_v0 }
 0x33c   :  { %v441_v3 = vrot.slane %v440_v2, 2 }
 0x33e   :  { %v442_v4 = vadd.f32 %v441_v3, %v440_v2 }
 0x340   :  { %v443_v5 = vrot.slane %v442_v4, 1 }
 0x342   :  { %v444_v6 = vadd.f32 %v443_v5, %v442_v4 }
 0x344   :  { %v445_v7 = vmul.f32 0.125, %v444_v6 }
 0x346   :  { %v446_v9 = vadd.f32 1e-05, %v445_v7 }
 0x348   :  { %719 = vrsqrt.f32 %v446_v9 }
 0x352   :  { %v720_v14 = vpop.eup %719 }
 0x353   :  { %v448_v15 = vmul.f32 %v720_v14, %v436_v62 }
 0x355   :  { %v453_v17 = vmul.f32 %v452_v12, %v448_v15 }
 0x357   :  { %v965_v18 = vadd.f32 %v457_v16, %v453_v17 }
 0x359   :  { %v463_v20 = vand.u32 2139095040, %v965_v18  ;;  %v460_v29 = vand.u32 2147483647, %v965_v18  ;;  %vm462_vm9 = vcmp.lt.s32.totalorder %v965_v18, 0  ;;  %vm552_vm15 = vweird.f32 %v965_v18 }
 0x35b   :  { %v464_v25 = vshrl.u32 %v463_v20, 23  ;;  %v467_v34 = vand.u32 8388607, %v460_v29  ;;  %vm461_vm10 = vcmp.le.f32.partialorder %v460_v29, 0.7853982 }
 0x35d   :  { %v588_v26 = vadd.s32 4294967169, %v464_v25  ;;  %v468_v13 = vor.u32 8388608, %v467_v34 }
 0x35f   :  { %v470_v28 = vadd.s32 1, %v588_v26 }
 0x361   :  { %vm471_vm2 = vcmp.gt.s32.totalorder %v470_v28, 0 }
 0x362   :  { %v472_v31 = vsel %vm471_vm2, %v470_v28, 0 }
 0x363   :  { %v474_v32 = vand.u32 31, %v472_v31  ;;  %v473_v35 = vshrl.u32 %v472_v31, 5 }
 0x365   :  { %v475_v22 = vsub.s32 32, %v474_v32  ;;  %v477_v24 = vshll.u32 %v777_v19, %v474_v32  ;;  %v480_v37 = vshll.u32 %v778_v23, %v474_v32  ;;  %v483_v40 = vshll.u32 %v779_v27, %v474_v32 }
 0x366   :  { %v486_v43 = vshll.u32 %v780_v30, %v474_v32  ;;  %v489_v45 = vshll.u32 %v781_v33, %v474_v32  ;;  %vm492_vm3 = vcmp.lt.s32.totalorder %v473_v35, 1  ;;  %vm495_vm4 = vcmp.lt.s32.totalorder %v473_v35, 4 }
 0x367   :  { %v478_v38 = vshrl.u32 %v778_v23, %v475_v22  ;;  %v481_v39 = vshrl.u32 %v779_v27, %v475_v22  ;;  %v484_v41 = vshrl.u32 %v780_v30, %v475_v22  ;;  %v487_v44 = vshrl.u32 %v781_v33, %v475_v22 }
 0x368   :  { %v490_v46 = vshrl.u32 %v782_v36, %v475_v22  ;;  %v476_v52 = vshrl.u32 %v777_v19, %v475_v22  ;;  %vm494_vm5 = vcmp.lt.s32.totalorder %v473_v35, 3  ;;  %vm493_vm6 = vcmp.lt.s32.totalorder %v473_v35, 2 }
 0x369   :  { %v479_v47 = vor.u32 %v478_v38, %v477_v24  ;;  %v482_v48 = vor.u32 %v481_v39, %v480_v37  ;;  %v485_v49 = vor.u32 %v484_v41, %v483_v40  ;;  %v488_v50 = vor.u32 %v487_v44, %v486_v43 }
 0x36a   :  { %v491_v23 = vor.u32 %v490_v46, %v489_v45  ;;  %v508_v36 = vshll.u32 %v468_v13, 8 }
 0x36b   :  { %v497_v21 = vsel %vm495_vm4, %v485_v49, 2102212464  ;;  %v500_v27 = vsel %vm492_vm3, %v479_v47, %v482_v48  ;;  %v504_v51 = vsel %vm492_vm3, %v482_v48, %v485_v49  ;;  %v501_v30 = vsel %vm495_vm4, %v488_v50, 920167782 }
 0x36c   :  { %v505_v53 = vsel %vm495_vm4, %v491_v23, 1326507024  ;;  %v502_v33 = vsel %vm494_vm5, %v485_v49, %v501_v30  ;;  %v496_v55 = vsel %vm492_vm3, %v476_v52, %v479_v47  ;;  %v498_v56 = vsel %vm494_vm5, %v482_v48, %v497_v21 }
 0x36d   :  { %v506_v54 = vsel %vm494_vm5, %v488_v50, %v505_v53  ;;  %v503_v57 = vsel %vm493_vm6, %v500_v27, %v502_v33  ;;  %v499_v62 = vsel %vm493_vm6, %v496_v55, %v498_v56  ;;  %v563_v47 = vmax.f32 %v965_v18, 0.0 }
 0x36e   :  { %v507_v58 = vsel %vm493_vm6, %v504_v51, %v506_v54  ;;  %v985_v61 = vmul.u32.u64.low %v508_v36, %v503_v57  ;;  %v986_v8 = vmul.u32.u64.high %v508_v36, %v503_v57, %v985_v61  ;;  %v515_v63 = vmul.u32 %v508_v36, %v499_v62 }
 0x36f   :  { %v982_v59 = vmul.u32.u64.low %v508_v36, %v507_v58  ;;  %v983_v60 = vmul.u32.u64.high %v508_v36, %v507_v58, %v982_v59 }
 0x370   :  { %v518_v19 = vadd.s32 1, %v986_v8 }
 0x371   :  { %vm517_vm7 = vc.u32 %v983_v60, %v985_v61  ;;  %v516_v12 = vadd.s32 %v985_v61, %v983_v60 }
 0x372   :  { %v519_v0 = vsel %vm517_vm7, %v518_v19, %v986_v8 }
 0x373   :  { %v520_v1 = vadd.s32 %v519_v0, %v515_v63 }
 0x375   :  { %v521_v2 = vadd.s32 536870912, %v520_v1 }
 0x377   :  { %v522_v3 = vshrl.u32 %v521_v2, 30 }
 0x379   :  { %v523_v4 = vshll.u32 %v522_v3, 30  ;;  %v546_v24 = vsub.s32 4, %v522_v3 }
 0x37b   :  { %v524_v5 = vsub.s32 %v520_v1, %v523_v4  ;;  %v547_v38 = vsel %vm462_vm9, %v546_v24, %v522_v3 }
 0x37c   :  { %v549_v39 = vsel %vm461_vm10, 0, %v547_v38 }
 0x37d   :  { %v526_v6 = vsub.s32 0, %v524_v5  ;;  %v553_v40 = vand.u32 3, %v549_v39 }
 0x37f   :  { %v589_v7 = vmin.u32 %v526_v6, %v524_v5  ;;  %vm558_vm11 = vcmp.eq.s32.totalorder %v553_v40, 2  ;;  %vm555_vm12 = vcmp.eq.s32.totalorder %v553_v40, 0  ;;  %vm554_vm14 = vcmp.lt.s32.totalorder %v553_v40, 2 }
 0x381   :  { %v528_v9 = vclz %v589_v7 }
 0x383   :  { %v590_v10 = vadd.s32 4294967294, %v528_v9 }
 0x385   :  { %vm591_vm8 = vcmp.lt.s32.totalorder %v590_v10, 0 }
 0x386   :  { %v531_v11 = vsel %vm591_vm8, 0, %v590_v10 }
 0x387   :  { %v532_v14 = vsub.s32 32, %v531_v11  ;;  %v536_v15 = vsub.s32 4294967266, %v531_v11  ;;  %v533_v16 = vshll.u32 %v524_v5, %v531_v11 }
 0x389   :  { %v534_v17 = vshrl.u32 %v516_v12, %v532_v14  ;;  %v537_v20 = vadd.s32 127, %v536_v15 }
 0x38b   :  { %v535_v25 = vor.u32 %v534_v17, %v533_v16  ;;  %v538_v26 = vshll.u32 %v537_v20, 23 }
 0x38d   :  { %v539_v28 = vor.u32 4788187, %v538_v26  ;;  %v542_v32 = vcvt.s32.f32 %v535_v25 }
 0x38f   :  { %v540_v31 = vand.u32 2147483647, %v539_v28 }
 0x391   :  { %v543_v22 = vmul.f32 %v542_v32, %v540_v31 }
 0x393   :  { %v544_v34 = vxor.u32 2147483648, %v543_v22 }
 0x395   :  { %v545_v35 = vsel %vm462_vm9, %v544_v34, %v543_v22 }
 0x396   :  { %v548_v37 = vsel %vm461_vm10, %v965_v18, %v545_v35 }
 0x397   :  { %721 = vcosq.f32 %v548_v37 }
 0x398   :  { %723 = vsinq.f32 %v548_v37 }
 0x3a1   :  { %v722_v41 = vpop.eup %721 }
 0x3a2   :  { %v724_v43 = vpop.eup %723  ;;  %v559_v44 = vxor.u32 2147483648, %v722_v41 }
 0x3a3   :  { %v556_v45 = vxor.u32 2147483648, %v724_v43 }
 0x3a4   :  { %v560_v46 = vsel %vm558_vm11, %v559_v44, %v724_v43 }
 0x3a5   :  { %v557_v29 = vsel %vm555_vm12, %v722_v41, %v556_v45 }
 0x3a6   :  { %v561_v13 = vsel %vm554_vm14, %v557_v29, %v560_v46 }
 0x3a7   :  { %v562_v48 = vsel %vm552_vm15, nan, %v561_v13 }
 0x3a8   :  { %v564_v49 = vsel %vm459_vm13, %v562_v48, %v563_v47 }
 0x3a9   :  { %565 = vst.msk [vmem:[#allocation5] sm:$0xff] %vm43_vm1, %v564_v49 }
 0x3aa   :  { %758 = shalt.err (!%p755_p12)
}
 0x3ab   :  { %s759_s20 = scalar_lea.hbm %s1017_s5, 128 }
 0x3ac   :  { %p760_p13 = scmp.ne.s32.totalorder %s1017_s5, %s759_s20  ;;  %p763_p0 = scmp.lt.u32.totalorder %s759_s20, %s1017_s5 }
 0x3ae   :  { %p765_p1 = pnand %p763_p0, %p760_p13 }
 0x3b0   :  { %768 = shalt.err (!%p765_p1)
}
 0x3b1   :  { %575 = dma.vmem_to_hbm [thread:$0]  %s573_s17, 128, %s1017_s5, [#allocation4]  }
 0x3b2   :  { %771 = dma.done.wait [#allocation4], 128  }
 0x3b3   :  { %772 = vsyncadd [#allocation4], 4294967168 }
 0x3b4   :  { %579 = vsyncpa [#allocation3], 1 }
 0x3b5   :  { %580 = vsyncpa [#allocation4], 1 }

</bundles_post_ra>
